<compile_context>
chip_gen: v7x
topology: tpu7x:2x2x1
jax: 0.10.0
libtpu: 0.0.40
codegen_flags: <defaults>
</compile_context>

<pallas_src>
import jax
import jax.numpy as jnp
from jax.experimental import pallas as pl
from jax.experimental.pallas import tpu as pltpu


# ----------------------------------------------------------------------------
# Fused kernel: encoder (Linear+ReLU)  ->  LM Linear (tiled over vocab)
#               -> online-softmax cross-entropy (finalized on last vocab tile)
# ----------------------------------------------------------------------------
def _fused_rag_kernel(
    x_ref,        # (tn, D)  bf16   query embeddings (row tile, resident over j)
    enc_w_ref,    # (D, D)   bf16   encoder weight (resident)
    enc_b_ref,    # (1, D)   f32    encoder bias (resident)
    lm_w_ref,     # (D, tv)  bf16   LM weight, vocab tile j
    lm_b_ref,     # (1, tv)  f32    LM bias, vocab tile j
    labels_ref,   # (tn, 1)  int32  label ids (resident)
    logits_ref,   # (tn, tv) f32    output logits tile
    loss_ref,     # (tn, 1)  f32    output per-row CE loss (written on last j)
    h_sc,         # (tn, D)  bf16   encoded query, computed once at j == 0
    m_sc,         # (tn, 1)  f32    running max
    l_sc,         # (tn, 1)  f32    running sum of exp(logit - m)
    p_sc,         # (tn, 1)  f32    picked (label) logit accumulator
):
    j = pl.program_id(1)
    tv = logits_ref.shape[-1]

    @pl.when(j == 0)
    def _():
        # dpr.source_encoder: relu(x @ We + be) -- computed once per row tile,
        # kept in VMEM (bf16) and reused for every vocab tile.
        h = jnp.dot(x_ref[...], enc_w_ref[...], preferred_element_type=jnp.float32)
        h = jnp.maximum(h + enc_b_ref[...], 0.0)
        h_sc[...] = h.astype(h_sc.dtype)
        m_sc[...] = jnp.full_like(m_sc, -jnp.inf)
        l_sc[...] = jnp.zeros_like(l_sc)
        p_sc[...] = jnp.zeros_like(p_sc)

    # language_model: logits for this vocab tile (bf16 operands, f32 accumulate)
    logits = jnp.dot(h_sc[...], lm_w_ref[...], preferred_element_type=jnp.float32)
    logits = logits + lm_b_ref[...]
    logits_ref[...] = logits.astype(logits_ref.dtype)

    # Online softmax statistics.
    tile_max = jnp.max(logits, axis=-1, keepdims=True)
    m_new = jnp.maximum(m_sc[...], tile_max)
    l_sc[...] = l_sc[...] * jnp.exp(m_sc[...] - m_new) + jnp.sum(
        jnp.exp(logits - m_new), axis=-1, keepdims=True
    )
    m_sc[...] = m_new

    # Picked (label) logit: no dense one-hot materialization.
    # NOTE: labels are assumed in [0, V); an out-of-range label yields loss=lse.
    col_ids = j * tv + jax.lax.broadcasted_iota(jnp.int32, logits.shape, 1)
    p_sc[...] += jnp.sum(
        jnp.where(col_ids == labels_ref[...], logits, 0.0), axis=-1, keepdims=True
    )

    @pl.when(j == pl.num_programs(1) - 1)
    def _():
        # loss = logsumexp(logits) - logit[label] = -log_softmax(logits)[label]
        loss_ref[...] = m_sc[...] + jnp.log(l_sc[...]) - p_sc[...]


def fused_rag_lm(x_bf16, enc_w_bf16, enc_b, lm_w_bf16, lm_b, labels, *, tv=512):
    """Fused encoder + language_model + cross_entropy on the N unique rows.

    Returns (logits[N, V] f32, loss[N] f32).
    """
    N, D = x_bf16.shape
    V = lm_w_bf16.shape[1]

    # Vocab tile: large & lane-dense (multiple of 128) where it divides V.
    if V % tv != 0 or V < tv:
        tv = V
    # Row tile: whole (small) batch per tile; tile at 128 for large N.
    if N <= 128:
        tn = N
    else:
        assert N % 128 == 0
        tn = 128

    grid = (N // tn, V // tv)

    logits, loss = pl.pallas_call(
        _fused_rag_kernel,
        out_shape=(
            jax.ShapeDtypeStruct((N, V), jnp.float32),
            jax.ShapeDtypeStruct((N, 1), jnp.float32),
        ),
        grid_spec=pltpu.PrefetchScalarGridSpec(
            num_scalar_prefetch=0,
            grid=grid,
            in_specs=[
                pl.BlockSpec((tn, D), lambda i, j: (i, 0)),   # x (resident over j)
                pl.BlockSpec((D, D), lambda i, j: (0, 0)),    # enc_w (resident)
                pl.BlockSpec((1, D), lambda i, j: (0, 0)),    # enc_b (resident)
                pl.BlockSpec((D, tv), lambda i, j: (0, j)),   # lm_w vocab tile
                pl.BlockSpec((1, tv), lambda i, j: (0, j)),   # lm_b vocab tile
                pl.BlockSpec((tn, 1), lambda i, j: (i, 0)),   # labels (resident)
            ],
            out_specs=[
                pl.BlockSpec((tn, tv), lambda i, j: (i, j)),  # logits
                pl.BlockSpec((tn, 1), lambda i, j: (i, 0)),   # loss (accum output)
            ],
            scratch_shapes=[
                pltpu.VMEM((tn, D), jnp.bfloat16),   # encoded query h
                pltpu.VMEM((tn, 1), jnp.float32),    # running max
                pltpu.VMEM((tn, 1), jnp.float32),    # running sum-exp
                pltpu.VMEM((tn, 1), jnp.float32),    # picked logit
            ],
        ),
        compiler_params=pltpu.CompilerParams(
            dimension_semantics=("parallel", "arbitrary"),
            vmem_limit_bytes=32 * 1024 * 1024,
        ),
    )(
        x_bf16,
        enc_w_bf16,
        enc_b.reshape(1, D),
        lm_w_bf16,
        lm_b.reshape(1, V),
        labels.reshape(N, 1).astype(jnp.int32),
    )
    return logits, loss.reshape(N)


# ----------------------------------------------------------------------------
# BaseRAG.forward (tensor-compute portion)
# ----------------------------------------------------------------------------
def base_rag_forward(query_embedding, labels_idx, params, k=4):
    """query_embedding: (B, D) raw embedding; labels_idx: (B,) int32 ids."""
    # TODO(synk): faiss.search_knn retrieval of source_word_embedding has no
    #             Pallas equivalent (external ANN index); skipped.

    # bf16 operands at the kernel boundary (halves DMA bytes, 2x MXU rate);
    # accumulation and softmax math stay f32 inside the kernel.
    x_bf16 = query_embedding.astype(jnp.bfloat16)
    enc_w_bf16 = params["enc_w"].astype(jnp.bfloat16)
    lm_w_bf16 = params["lm_w"].astype(jnp.bfloat16)

    # Encoder + LM + CE on the B unique rows only.
    logits, loss = fused_rag_lm(
        x_bf16, enc_w_bf16, params["enc_b"], lm_w_bf16, params["lm_b"], labels_idx
    )

    if k > 1:
        # Torch: query_embedding.unsqueeze(1).repeat(1,k,1).view(-1,D) produces
        # k identical copies of each row -> identical logits / per-row loss, so
        # we duplicate the results instead of redoing the matmul k times.
        model_output = jnp.repeat(logits, k, axis=0)   # (B*k, V)
        loss = jnp.repeat(loss, k, axis=0)             # (B*k,)
    else:
        model_output = logits

    # TODO(synk): coupling_loss raises NotImplementedError in the reference;
    #             the module's concrete autoregressive_loss is returned instead.
    return {"Loss": loss, "model_output": model_output}


# ----------------------------------------------------------------------------
# Reference (pure JAX, same bf16-operand / f32-accumulate numerics)
# ----------------------------------------------------------------------------
def reference_forward(query_embedding, labels_idx, params, k=4):
    xb = query_embedding.astype(jnp.bfloat16)
    ewb = params["enc_w"].astype(jnp.bfloat16)
    lwb = params["lm_w"].astype(jnp.bfloat16)
    h = jnp.maximum(
        jnp.dot(xb, ewb, preferred_element_type=jnp.float32) + params["enc_b"], 0.0
    )
    hb = h.astype(jnp.bfloat16)
    logits = jnp.dot(hb, lwb, preferred_element_type=jnp.float32) + params["lm_b"]
    logp = jax.nn.log_softmax(logits, axis=-1)
    loss = -jnp.take_along_axis(logp, labels_idx[:, None], axis=-1)[:, 0]
    return {
        "Loss": jnp.repeat(loss, k, axis=0),
        "model_output": jnp.repeat(logits, k, axis=0),
    }


if __name__ == "__main__":
    B, D, V, K = 2, 128, 1024, 4   # batch, embd_size, vocab_size, retrieval k

    key = jax.random.PRNGKey(0)
    k1, k2, k3, k4, k5, k6 = jax.random.split(key, 6)

    params = {
        "enc_w": jax.random.normal(k1, (D, D), jnp.float32) * 0.05,
        "enc_b": jax.random.normal(k2, (D,), jnp.float32) * 0.01,
        "lm_w": jax.random.normal(k3, (D, V), jnp.float32) * 0.05,
        "lm_b": jax.random.normal(k4, (V,), jnp.float32) * 0.01,
    }
    query_embedding = jax.random.normal(k5, (B, D), jnp.float32)
    labels_idx = jax.random.randint(k6, (B,), 0, V, jnp.int32)

    out = base_rag_forward(query_embedding, labels_idx, params, k=K)
    jax.block_until_ready(out)

    ref = reference_forward(query_embedding, labels_idx, params, k=K)
    assert out["model_output"].shape == (B * K, V)
    assert out["Loss"].shape == (B * K,)
    assert jnp.allclose(out["model_output"], ref["model_output"], atol=2e-3, rtol=2e-3)
    assert jnp.allclose(out["Loss"], ref["Loss"], atol=2e-3, rtol=2e-3)

    print("KERNEL_OK")
</pallas_src>

<mosaic_0001>
module attributes {stable_mosaic.version = 11 : i64} {
  func.func @_fused_rag_kernel(%arg0: i32, %arg1: i32, %arg2: memref<2x128xbf16, #tpu.memory_space<vmem>>, %arg3: memref<128x128xbf16, #tpu.memory_space<vmem>>, %arg4: memref<1x128xf32, #tpu.memory_space<vmem>>, %arg5: memref<128x512xbf16, #tpu.memory_space<vmem>>, %arg6: memref<1x512xf32, #tpu.memory_space<vmem>>, %arg7: memref<2x1xi32, #tpu.memory_space<vmem>>, %arg8: memref<2x512xf32, #tpu.memory_space<vmem>>, %arg9: memref<2x1xf32, #tpu.memory_space<vmem>>, %arg10: memref<2x128xbf16, #tpu.memory_space<vmem>>, %arg11: memref<2x1xf32, #tpu.memory_space<vmem>>, %arg12: memref<2x1xf32, #tpu.memory_space<vmem>>, %arg13: memref<2x1xf32, #tpu.memory_space<vmem>>) attributes {dimension_semantics = [#tpu.dimension_semantics<parallel>, #tpu.dimension_semantics<arbitrary>], iteration_bounds = array<i64: 1, 2>, scalar_prefetch = 0 : i64, scratch_operands = 4 : i64, tpu.core_type = #tpu.core_type<tc>, window_params = [{transform_indices = @transform_0, window_bounds = array<i64: 2, 128>}, {pipeline_mode = #tpu.pipeline_mode<synchronous>, transform_indices = @transform_1, window_bounds = array<i64: 128, 128>}, {pipeline_mode = #tpu.pipeline_mode<synchronous>, transform_indices = @transform_2, window_bounds = array<i64: 1, 128>}, {transform_indices = @transform_3, window_bounds = array<i64: 128, 512>}, {transform_indices = @transform_4, window_bounds = array<i64: 1, 512>}, {transform_indices = @transform_5, window_bounds = array<i64: 2, 1>}, {transform_indices = @transform_6, window_bounds = array<i64: 2, 512>}, {transform_indices = @transform_7, window_bounds = array<i64: 2, 1>}]} {
    %c0_i32 = arith.constant 0 : i32
    %0 = arith.cmpi eq, %arg1, %c0_i32 : i32
    %1 = arith.extui %0 : i1 to i32
    %c0_i32_0 = arith.constant 0 : i32
    %2 = arith.cmpi ne, %1, %c0_i32_0 : i32
    scf.if %2 {
      %c0_29 = arith.constant 0 : index
      %c0_30 = arith.constant 0 : index
      %44 = vector.load %arg2[%c0_29, %c0_30] : memref<2x128xbf16, #tpu.memory_space<vmem>>, vector<2x128xbf16>
      %c0_31 = arith.constant 0 : index
      %c0_32 = arith.constant 0 : index
      %45 = vector.load %arg3[%c0_31, %c0_32] : memref<128x128xbf16, #tpu.memory_space<vmem>>, vector<128x128xbf16>
      %cst_33 = arith.constant dense<0.000000e+00> : vector<2x128xf32>
      %46 = tpu.matmul %44, %45, %cst_33 {dimension_numbers = #tpu.dot_dimension_numbers<[1], [0], [0], [1], [0, 0, 1, 1], [], []>} : vector<2x128xbf16>, vector<128x128xbf16>, vector<2x128xf32> -> vector<2x128xf32>
      %c0_34 = arith.constant 0 : index
      %c0_35 = arith.constant 0 : index
      %47 = vector.load %arg4[%c0_34, %c0_35] : memref<1x128xf32, #tpu.memory_space<vmem>>, vector<1x128xf32>
      %48 = vector.broadcast %47 : vector<1x128xf32> to vector<2x128xf32>
      %49 = arith.addf %46, %48 : vector<2x128xf32>
      %cst_36 = arith.constant 0.000000e+00 : f32
      %50 = vector.broadcast %cst_36 : f32 to vector<2x128xf32>
      %51 = arith.maximumf %49, %50 : vector<2x128xf32>
      %52 = arith.truncf %51 : vector<2x128xf32> to vector<2x128xbf16>
      %c0_37 = arith.constant 0 : index
      %c0_38 = arith.constant 0 : index
      %53 = vector.load %arg10[%c0_37, %c0_38] : memref<2x128xbf16, #tpu.memory_space<vmem>>, vector<2x128xbf16>
      tpu.vector_store %arg10[%c0_37, %c0_38], %52 {strides = array<i32>} : memref<2x128xbf16, #tpu.memory_space<vmem>>, vector<2x128xbf16>,
      %cst_39 = arith.constant 0xFF800000 : f32
      %54 = vector.broadcast %cst_39 : f32 to vector<2x1xf32>
      %c0_40 = arith.constant 0 : index
      %c0_41 = arith.constant 0 : index
      %55 = vector.load %arg11[%c0_40, %c0_41] : memref<2x1xf32, #tpu.memory_space<vmem>>, vector<2x1xf32>
      tpu.vector_store %arg11[%c0_40, %c0_41], %54 {strides = array<i32>} : memref<2x1xf32, #tpu.memory_space<vmem>>, vector<2x1xf32>,
      %cst_42 = arith.constant 0.000000e+00 : f32
      %56 = vector.broadcast %cst_42 : f32 to vector<2x1xf32>
      %c0_43 = arith.constant 0 : index
      %c0_44 = arith.constant 0 : index
      %57 = vector.load %arg12[%c0_43, %c0_44] : memref<2x1xf32, #tpu.memory_space<vmem>>, vector<2x1xf32>
      tpu.vector_store %arg12[%c0_43, %c0_44], %56 {strides = array<i32>} : memref<2x1xf32, #tpu.memory_space<vmem>>, vector<2x1xf32>,
      %cst_45 = arith.constant 0.000000e+00 : f32
      %58 = vector.broadcast %cst_45 : f32 to vector<2x1xf32>
      %c0_46 = arith.constant 0 : index
      %c0_47 = arith.constant 0 : index
      %59 = vector.load %arg13[%c0_46, %c0_47] : memref<2x1xf32, #tpu.memory_space<vmem>>, vector<2x1xf32>
      tpu.vector_store %arg13[%c0_46, %c0_47], %58 {strides = array<i32>} : memref<2x1xf32, #tpu.memory_space<vmem>>, vector<2x1xf32>,
    } else {
    }
    %c0 = arith.constant 0 : index
    %c0_1 = arith.constant 0 : index
    %3 = vector.load %arg10[%c0, %c0_1] : memref<2x128xbf16, #tpu.memory_space<vmem>>, vector<2x128xbf16>
    %c0_2 = arith.constant 0 : index
    %c0_3 = arith.constant 0 : index
    %4 = vector.load %arg5[%c0_2, %c0_3] : memref<128x512xbf16, #tpu.memory_space<vmem>>, vector<128x512xbf16>
    %cst = arith.constant dense<0.000000e+00> : vector<2x512xf32>
    %5 = tpu.matmul %3, %4, %cst {dimension_numbers = #tpu.dot_dimension_numbers<[1], [0], [0], [1], [0, 0, 1, 1], [], []>} : vector<2x128xbf16>, vector<128x512xbf16>, vector<2x512xf32> -> vector<2x512xf32>
    %c0_4 = arith.constant 0 : index
    %c0_5 = arith.constant 0 : index
    %6 = vector.load %arg6[%c0_4, %c0_5] : memref<1x512xf32, #tpu.memory_space<vmem>>, vector<1x512xf32>
    %7 = vector.broadcast %6 : vector<1x512xf32> to vector<2x512xf32>
    %8 = arith.addf %5, %7 : vector<2x512xf32>
    %c0_6 = arith.constant 0 : index
    %c0_7 = arith.constant 0 : index
    %9 = vector.load %arg8[%c0_6, %c0_7] : memref<2x512xf32, #tpu.memory_space<vmem>>, vector<2x512xf32>
    tpu.vector_store %arg8[%c0_6, %c0_7], %8 {strides = array<i32>} : memref<2x512xf32, #tpu.memory_space<vmem>>, vector<2x512xf32>,
    %cst_8 = arith.constant dense<0xFF800000> : vector<2xf32>
    %10 = vector.multi_reduction <maximumf>, %8, %cst_8 [1] : vector<2x512xf32> to vector<2xf32>
    %11 = vector.shape_cast %10 : vector<2xf32> to vector<2x1xf32>
    %c0_9 = arith.constant 0 : index
    %c0_10 = arith.constant 0 : index
    %12 = vector.load %arg11[%c0_9, %c0_10] : memref<2x1xf32, #tpu.memory_space<vmem>>, vector<2x1xf32>
    %13 = arith.maximumf %12, %11 : vector<2x1xf32>
    %c0_11 = arith.constant 0 : index
    %c0_12 = arith.constant 0 : index
    %14 = vector.load %arg12[%c0_11, %c0_12] : memref<2x1xf32, #tpu.memory_space<vmem>>, vector<2x1xf32>
    %c0_13 = arith.constant 0 : index
    %c0_14 = arith.constant 0 : index
    %15 = vector.load %arg11[%c0_13, %c0_14] : memref<2x1xf32, #tpu.memory_space<vmem>>, vector<2x1xf32>
    %16 = arith.subf %15, %13 : vector<2x1xf32>
    %17 = math.exp %16 : vector<2x1xf32>
    %18 = arith.mulf %14, %17 : vector<2x1xf32>
    %19 = vector.broadcast %13 : vector<2x1xf32> to vector<2x512xf32>
    %20 = arith.subf %8, %19 : vector<2x512xf32>
    %21 = math.exp %20 : vector<2x512xf32>
    %cst_15 = arith.constant dense<0.000000e+00> : vector<2xf32>
    %22 = vector.multi_reduction <add>, %21, %cst_15 [1] : vector<2x512xf32> to vector<2xf32>
    %23 = vector.shape_cast %22 : vector<2xf32> to vector<2x1xf32>
    %24 = arith.addf %18, %23 : vector<2x1xf32>
    %c0_16 = arith.constant 0 : index
    %c0_17 = arith.constant 0 : index
    %25 = vector.load %arg12[%c0_16, %c0_17] : memref<2x1xf32, #tpu.memory_space<vmem>>, vector<2x1xf32>
    tpu.vector_store %arg12[%c0_16, %c0_17], %24 {strides = array<i32>} : memref<2x1xf32, #tpu.memory_space<vmem>>, vector<2x1xf32>,
    %c0_18 = arith.constant 0 : index
    %c0_19 = arith.constant 0 : index
    %26 = vector.load %arg11[%c0_18, %c0_19] : memref<2x1xf32, #tpu.memory_space<vmem>>, vector<2x1xf32>
    tpu.vector_store %arg11[%c0_18, %c0_19], %13 {strides = array<i32>} : memref<2x1xf32, #tpu.memory_space<vmem>>, vector<2x1xf32>,
    %c512_i32 = arith.constant 512 : i32
    %27 = arith.muli %arg1, %c512_i32 : i32
    %28 = tpu.iota {dimensions = array<i32: 1>} : vector<2x512xi32>
    %29 = vector.broadcast %27 : i32 to vector<2x512xi32>
    %30 = arith.addi %29, %28 : vector<2x512xi32>
    %c0_20 = arith.constant 0 : index
    %c0_21 = arith.constant 0 : index
    %31 = vector.load %arg13[%c0_20, %c0_21] : memref<2x1xf32, #tpu.memory_space<vmem>>, vector<2x1xf32>
    %c0_22 = arith.constant 0 : index
    %c0_23 = arith.constant 0 : index
    %32 = vector.load %arg7[%c0_22, %c0_23] : memref<2x1xi32, #tpu.memory_space<vmem>>, vector<2x1xi32>
    %33 = vector.broadcast %32 : vector<2x1xi32> to vector<2x512xi32>
    %34 = arith.cmpi eq, %30, %33 : vector<2x512xi32>
    %cst_24 = arith.constant 0.000000e+00 : f32
    %35 = vector.broadcast %cst_24 : f32 to vector<2x512xf32>
    %36 = arith.select %34, %8, %35 : vector<2x512xi1>, vector<2x512xf32>
    %cst_25 = arith.constant dense<0.000000e+00> : vector<2xf32>
    %37 = vector.multi_reduction <add>, %36, %cst_25 [1] : vector<2x512xf32> to vector<2xf32>
    %38 = vector.shape_cast %37 : vector<2xf32> to vector<2x1xf32>
    %39 = arith.addf %31, %38 : vector<2x1xf32>
    %c0_26 = arith.constant 0 : index
    %c0_27 = arith.constant 0 : index
    %40 = vector.load %arg13[%c0_26, %c0_27] : memref<2x1xf32, #tpu.memory_space<vmem>>, vector<2x1xf32>
    tpu.vector_store %arg13[%c0_26, %c0_27], %39 {strides = array<i32>} : memref<2x1xf32, #tpu.memory_space<vmem>>, vector<2x1xf32>,
    %c1_i32 = arith.constant 1 : i32
    %41 = arith.cmpi eq, %arg1, %c1_i32 : i32
    %42 = arith.extui %41 : i1 to i32
    %c0_i32_28 = arith.constant 0 : i32
    %43 = arith.cmpi ne, %42, %c0_i32_28 : i32
    scf.if %43 {
      %c0_29 = arith.constant 0 : index
      %c0_30 = arith.constant 0 : index
      %44 = vector.load %arg11[%c0_29, %c0_30] : memref<2x1xf32, #tpu.memory_space<vmem>>, vector<2x1xf32>
      %c0_31 = arith.constant 0 : index
      %c0_32 = arith.constant 0 : index
      %45 = vector.load %arg12[%c0_31, %c0_32] : memref<2x1xf32, #tpu.memory_space<vmem>>, vector<2x1xf32>
      %46 = math.log %45 : vector<2x1xf32>
      %47 = arith.addf %44, %46 : vector<2x1xf32>
      %c0_33 = arith.constant 0 : index
      %c0_34 = arith.constant 0 : index
      %48 = vector.load %arg13[%c0_33, %c0_34] : memref<2x1xf32, #tpu.memory_space<vmem>>, vector<2x1xf32>
      %49 = arith.subf %47, %48 : vector<2x1xf32>
      %c0_35 = arith.constant 0 : index
      %c0_36 = arith.constant 0 : index
      %50 = vector.load %arg9[%c0_35, %c0_36] : memref<2x1xf32, #tpu.memory_space<vmem>>, vector<2x1xf32>
      tpu.vector_store %arg9[%c0_35, %c0_36], %49 {strides = array<i32>} : memref<2x1xf32, #tpu.memory_space<vmem>>, vector<2x1xf32>,
    } else {
    }
    return
  }
  func.func @transform_0(%arg0: i32, %arg1: i32) -> (i32, i32) {
    %c0_i32 = arith.constant 0 : i32
    %c0_i32_0 = arith.constant 0 : i32
    return %arg0, %c0_i32 : i32, i32
  }
  func.func @transform_1(%arg0: i32, %arg1: i32) -> (i32, i32) {
    %c0_i32 = arith.constant 0 : i32
    %c0_i32_0 = arith.constant 0 : i32
    %c0_i32_1 = arith.constant 0 : i32
    return %c0_i32, %c0_i32_0 : i32, i32
  }
  func.func @transform_2(%arg0: i32, %arg1: i32) -> (i32, i32) {
    %c0_i32 = arith.constant 0 : i32
    %c0_i32_0 = arith.constant 0 : i32
    %c0_i32_1 = arith.constant 0 : i32
    return %c0_i32, %c0_i32_0 : i32, i32
  }
  func.func @transform_3(%arg0: i32, %arg1: i32) -> (i32, i32) {
    %c0_i32 = arith.constant 0 : i32
    %c0_i32_0 = arith.constant 0 : i32
    return %c0_i32, %arg1 : i32, i32
  }
  func.func @transform_4(%arg0: i32, %arg1: i32) -> (i32, i32) {
    %c0_i32 = arith.constant 0 : i32
    %c0_i32_0 = arith.constant 0 : i32
    return %c0_i32, %arg1 : i32, i32
  }
  func.func @transform_5(%arg0: i32, %arg1: i32) -> (i32, i32) {
    %c0_i32 = arith.constant 0 : i32
    %c0_i32_0 = arith.constant 0 : i32
    return %arg0, %c0_i32 : i32, i32
  }
  func.func @transform_6(%arg0: i32, %arg1: i32) -> (i32, i32) {
    %c0_i32 = arith.constant 0 : i32
    return %arg0, %arg1 : i32, i32
  }
  func.func @transform_7(%arg0: i32, %arg1: i32) -> (i32, i32) {
    %c0_i32 = arith.constant 0 : i32
    %c0_i32_0 = arith.constant 0 : i32
    return %arg0, %c0_i32 : i32, i32
  }
}

</mosaic_0001>

<bundles_post_ra>
// kernel: tpu_custom_call.1
= control target key start
LH: loop header
LB: loop body
LE: loop exit
PB: predicated region body
PF: predicated region fallthrough
CT: control target
= control target key end

     0   :  { %13 = vsyncpa [#allocation7], 0  ;;  %s1855_s0 = inlined_call_operand.vmem [shape: bf16[2,128], index: 0, kind: input, shape index: {}]   ;;  %s1856_s1 = inlined_call_operand.hbm [shape: bf16[128,128], index: 1, kind: input, shape index: {}]   ;;  %s1857_s2 = inlined_call_operand.vmem [shape: f32[1,128], index: 2, kind: input, shape index: {}]   ;;  %s1858_s3 = inlined_call_operand.hbm [shape: bf16[128,1024], index: 3, kind: input, shape index: {}]   ;;  %s1859_s4 = inlined_call_operand.vmem [shape: f32[1,1024], index: 4, kind: input, shape index: {}]   ;;  %s1860_s5 = inlined_call_operand.vmem [shape: s32[2,1], index: 5, kind: input, shape index: {}]   ;;  %s1861_s6 = inlined_call_operand.hbm [shape: f32[2,1024], index: 6, kind: output, shape index: {0}]   ;;  %s1862_s7 = inlined_call_operand.vmem [shape: f32[2,1], index: 7, kind: output, shape index: {1}]  }
   0x1   :  { %14 = vsyncpa [#allocation10], 0 }
   0x2   :  { %16 = vsyncpa [#allocation10 + $0x1], 0 }
   0x3   :  { %17 = vsyncpa [#allocation8], 0 }
   0x4   :  { %19 = vsyncpa [#allocation8 + $0x1], 0  ;;  %s1549_s24 = smov 0   ;;  %s1551_s25 = smov 0  }
   0x5   :  { %s1553_s26 = smov 0   ;;  %s1555_s27 = smov 0  }
   0x6   :  { %s1557_s28 = smov 0   ;;  %s1559_s29 = smov 0  }
   0x7 LB: > { %1873 = sst [smem:[#allocation15_spill]] %s1474_s24  ;;  %s1101_s30 = sadd.s32 4294967295, %s1494_s29   ;;  %s1494_s29 = sphi %s1559_s29, %s25_s29   ;;  %s1490_s28 = sphi %s1557_s28, %s1898_s28   ;;  %s1486_s27 = sphi %s1555_s27, %s1897_s27   ;;  %s1482_s26 = sphi %s1553_s26, %s1896_s26   ;;  %s1478_s25 = sphi %s1551_s25, %s1895_s25   ;;  %s1474_s24 = sphi %s1549_s24, %s1894_s24  }
   0x8   : > { %1874 = sst [smem:[#allocation16_spill]] %s1494_s29  ;;  %s1102_s8 = sadd.s32 4294967294, %s1494_s29  }
   0x9   : > { %p119_p0 = scmp.ne.s32.totalorder %s1482_s26, %s1478_s25  ;;  %p120_p1 = scmp.eq.s32.totalorder %s1494_s29, 0 }
   0xa   : > { %p125_p2 = scmp.ne.s32.totalorder %s1478_s25, %s1474_s24  ;;  %p1586_p3 = scmp.eq.s32.totalorder %s1101_s30, 0 }
   0xb   : > { %p1590_p4 = por %p120_p1, %p119_p0  ;;  %p203_p5 = scmp.eq.s32.totalorder %s1101_s30, 1 }
   0xc   : > { %s1875_s9 = scalar_select %p1586_p3, 1, 0 }
   0xd   : > { %p1596_p6 = por %p1586_p3, %p125_p2  ;;  %p209_p7 = scmp.eq.s32.totalorder %s1102_s8, 1 }
   0xe   : > { %p1600_p8 = por %p203_p5, %p119_p0  ;;  %p1103_p9 = scmp.ge.s32.totalorder %s1494_s29, 1 }
   0xf   : > { %s1877_s11 = scalar_select %p1596_p6, 1, 0 }
  0x10   : > { %s1878_s12 = scalar_select %p1600_p8, 1, 0 }
  0x11   : > { %p1605_p10 = por %p209_p7, %p125_p2  ;;  %p242_p11 = scmp.lt.s32.totalorder %s1494_s29, 3 }
  0x12   : > { %s1496_s15 = smov [#allocation6]   ;;  %p1218_p1 = scmp.lt.s32.totalorder %s1494_s29, 2 }
  0x13   : > { %s1879_s13 = scalar_select %p1605_p10, 1, 0 }
  0x14   : > { %p1610_p12 = pnand %p1103_p9, %p242_p11  ;;  %s260_s16 = sshll.u32 %s1496_s15, 4  ;;  %s1614_s16 = int_to_ptr.vmem [resolvable:$true] %s260_s16 }
  0x15   : > { %1880 = sst [smem:[#allocation17_spill]] %s1879_s13  ;;  %p1628_p2 = pnand %p1218_p1, %p1590_p4 }
  0x16   : > { %s1881_s14 = scalar_select %p1610_p12, 1, 0 }
  0x17   : > { %p1205_p13 = pneg %p1610_p12  ;;  %s34_s19 = sadd.s32 1, %s1490_s28 }
  0x18   : > { %s1883_s18 = scalar_select %p1628_p2, 1, 0 }
  0x19   : > { %p1622_p5 = pnand %p1205_p13, %p1586_p3  ;;  %s1350_s22 = scalar_lea.hbm %s1856_s1, 1024 }
  0x1a   : > { %p1351_p7 = scmp.ne.s32.totalorder %s1856_s1, %s1350_s22  ;;  %p1357_p4 = scmp.lt.u32.totalorder %s1350_s22, %s1856_s1 }
  0x1b   : > { %p1352_p9 = pneg %p1622_p5 }
  0x1d   : > { %p1353_p11 = pnand %p1352_p9, %p1351_p7 }
  0x1f   : > { %p1354_p13 = pneg %p1353_p11 }
  0x21   : > { %p1359_p1 = pnand %p1357_p4, %p1354_p13 }
  0x23   : > { %1362 = shalt.err (!%p1359_p1)
}
  0x24   : > { %s1363_s15 = scalar_lea.vmem %s1614_s16, 1024  ;;  %p1371_p6 = scmp.lt.s32.totalorder %s1614_s16, %s1614_s16 }
  0x25   : > { %p1364_p0 = scmp.ne.s32.totalorder %s1614_s16, %s1363_s15  ;;  %p1372_p3 = scmp.lt.s32.totalorder %s1363_s15, %s1363_s15 }
  0x27   : > { %p1366_p10 = pnand %p1364_p0, %p1352_p9  ;;  %p1373_p12 = por %p1372_p3, %p1371_p6 }
  0x29   : > { %p1367_p8 = pneg %p1366_p10 }
  0x2b   : > { %p1374_p2 = pnand %p1373_p12, %p1367_p8 }
  0x2d   : > { %1377 = shalt.err (!%p1374_p2)
}
  0x2e   : > { %s1497_s20 = smov 64   ;;  %s1498_s21 = smov 4  }
  0x2f   : > { %1208 = dma.hbm_to_vmem [thread:$0]  (!%p1622_p5), %s1856_s1, 1024, %s1614_s16, [#allocation7], %s1497_s20, %s1497_s20, %s1498_s21  }
  0x30   : > { %p35_p10 = scmp.ge.s32.totalorder %s34_s19, 2  ;;  %s112_s30 = sadd.s32 1, %s1482_s26 }
  0x31   : > { %s284_s8 = sand.u32 1, %s1482_s26   ;;  %s1166_s29 = sshll.u32 %s1490_s28, 8 }
  0x32   : > { %s1900_s19 = smov (%p35_p10, %s34_s19), 0  ;;  %s1108_s10 = sshll.u32 %s284_s8, 8 }
  0x33   : > { %s109_s15 = ssub.s32 %s1490_s28, %s1900_s19  ;;  %s1664_s17 = scalar_lea.hbm %s1858_s3, %s1166_s29 }
  0x34   : > { %p110_p3 = scmp.eq.s32.totalorder %s109_s15, 0  ;;  %s288_s16 = scalar_lea.vmem [#allocation9], %s1108_s10 }
  0x35   : > { %s295_s20 = sshll.u32 %s288_s16, 4  ;;  %s1671_s22 = scalar_lea.sflag [#allocation10], %s284_s8  ;;  %s1669_s20 = int_to_ptr.vmem [resolvable:$true] %s295_s20 }
  0x36   : > { %s1667_s21 = scalar_select %p110_p3, %s1482_s26, %s112_s30  }
  0x37   : > { %s1378_s23 = scalar_lea.hbm %s1664_s17, 4096  ;;  %p1884_p8 = scmp.ne.s32.totalorder %s1883_s18, 0 }
  0x38   : > { %p1379_p6 = scmp.ne.s32.totalorder %s1664_s17, %s1378_s23  ;;  %s1383_s13 = scalar_lea.hbm %s1858_s3, 8192 }
  0x39   : > { %p1380_p12 = pneg %p1884_p8  ;;  %p1384_p2 = scmp.lt.u32.totalorder %s1664_s17, %s1858_s3 }
  0x3a   : > { %p1385_p7 = scmp.lt.u32.totalorder %s1383_s13, %s1378_s23  ;;  %p1387_p11 = scmp.lt.u32.totalorder %s1378_s23, %s1664_s17 }
  0x3b   : > { %p1381_p0 = pnand %p1380_p12, %p1379_p6 }
  0x3c   : > { %p1386_p9 = por %p1385_p7, %p1384_p2 }
  0x3d   : > { %p1382_p5 = pneg %p1381_p0 }
  0x3e   : > { %p1388_p13 = por %p1387_p11, %p1386_p9 }
  0x40   : > { %p1389_p4 = pnand %p1388_p13, %p1382_p5 }
  0x42   : > { %1392 = shalt.err (!%p1389_p4)
}
  0x43   : > { %s1393_s30 = scalar_lea.vmem %s1669_s20, 4096  ;;  %s1499_s8 = smov [#allocation9]  }
  0x44   : > { %p1394_p1 = scmp.ne.s32.totalorder %s1669_s20, %s1393_s30  ;;  %s1398_s16 = sshll.u32 %s1499_s8, 4  ;;  %s1399_s16 = int_to_ptr.vmem [resolvable:$false] %s1398_s16 }
  0x45   : > { %s1400_s24 = scalar_lea.vmem %s1399_s16, 8192  ;;  %p1401_p6 = scmp.lt.s32.totalorder %s1669_s20, %s1399_s16 }
  0x46   : > { %p1396_p10 = pnand %p1394_p1, %p1380_p12  ;;  %p1402_p0 = scmp.lt.s32.totalorder %s1400_s24, %s1393_s30 }
  0x48   : > { %p1397_p3 = pneg %p1396_p10  ;;  %p1403_p2 = por %p1402_p0, %p1401_p6 }
  0x4a   : > { %p1404_p7 = pnand %p1403_p2, %p1397_p3 }
  0x4c   : > { %1407 = shalt.err (!%p1404_p7)
}
  0x4d   : > { %s1500_s23 = smov 512   ;;  %s1501_s29 = smov 256  }
  0x4e   : > { %s1502_s13 = smov 16   ;;  %p1885_p12 = scmp.ne.s32.totalorder %s1881_s14, 0 }
  0x4f   : > { %1212 = dma.hbm_to_vmem [thread:$0]  (!%p1884_p8), %s1664_s17, 4096, %s1669_s20, %s1671_s22, %s1500_s23, %s1501_s29, %s1502_s13  }
  0x50   : > { %315 = sbr.rel (%p1885_p12) target bundleno = 1092 (0x444), region = 44  ;;  %p1886_p5 = scmp.ne.s32.totalorder (!%p1885_p12), %s1875_s9, 0 }
  0x57   : > { %1461 = dma.done.wait (%p1886_p5), [#allocation7], 1024  }
  0x58   : > { %1463 = vsyncadd (%p1886_p5), [#allocation7], 4294966272  ;;  %s1706_s10 = sand.u32 1, %s1478_s25   ;;  %p1887_p8 = scmp.ne.s32.totalorder %s1877_s11, 0 }
  0x59   : > { %s1113_s15 = sshll.u32 %s1706_s10, 8  ;;  %s322_s30 = scalar_lea.sflag [#allocation10], %s1706_s10 }
  0x5a   : > { %s1710_s8 = scalar_lea.vmem [#allocation9], %s1113_s15 }
  0x5b   : > { %1465 = dma.done.wait (%p1887_p8), %s322_s30, 4096  }
  0x5c   : > { %1467 = vsyncadd (%p1887_p8), %s322_s30, 4294963200  ;;  %s1114_s14 = sshll.u32 %s1706_s10, 3  ;;  %s1115_s9 = sshll.u32 %s1486_s27, 2 }
  0x5d   : > { %p376_p9 = scmp.lt.s32.totalorder %s1115_s9, 7  ;;  %s1724_s22 = scalar_lea.vmem [#allocation11], %s1114_s14 }
  0x5e   : > { %p1116_p11 = scmp.ne.s32.totalorder %s1486_s27, 0 }
  0x5f   : > { %s1902_s9 = smov (!%p376_p9, %s1115_s9), 7  ;;  %vm509_vm0 = vcmask (!%p1116_p11), 1024   ;;  %v1280_v0 = vld [vmem:[#allocation6] sm:$0xff] (!%p1116_p11)   ;;  %v1503_v1 = vmov (!%p1116_p11), 0.0   ;;  %v1504_v2 = vmov (!%p1116_p11), -inf   ;;  %v1281_v3 = vld [vmem:[#allocation6 + $0x8] sm:$0xff] (!%p1116_p11)  }
  0x60   : > { %s378_s20 = scalar_lea.vmem %s1859_s4, %s1902_s9  ;;  %393 = sbr.rel (%p1116_p11) target bundleno = 347 (0x15b), region = 56  ;;  %1177 = vmatprep.subr.bf16.mxu0 (!%p1116_p11), %v1503_v1  ;;  %510 = vst.msk [vmem:[#allocation3] sm:$0x3] (!%p1116_p11), %vm509_vm0, %v1504_v2  ;;  %511 = vst.msk [vmem:[#allocation4] sm:$0x3] (!%p1116_p11), %vm509_vm0, %v1503_v1  ;;  %vm1505_vm1 = vmmov (!%p1116_p11), 0  }
  0x61   : > { %512 = vst.msk [vmem:[#allocation5] sm:$0x3] (!%p1116_p11), %vm509_vm0, %v1503_v1  ;;  %1178 = vmatpush3.bf16.msra.mxu0 (!%p1116_p11), %v1280_v0  ;;  %1193 = vmatprep.mubr.msk.bf16.mxu0 (!%p1116_p11), %vm1505_vm1, %v1503_v1  ;;  %v1282_v4 = vld [vmem:[#allocation6 + $0x10] sm:$0xff] (!%p1116_p11)   ;;  %v1283_v5 = vld [vmem:[#allocation6 + $0x18] sm:$0xff] (!%p1116_p11)   ;;  %v1284_v6 = vld [vmem:[#allocation6 + $0x20] sm:$0xff] (!%p1116_p11)  }
  0x62   : > { %1179 = vmatprep.subr.bf16.mxu0 (!%p1116_p11), %v1503_v1  ;;  %v1285_v7 = vld [vmem:[#allocation6 + $0x28] sm:$0xff] (!%p1116_p11)   ;;  %v1286_v8 = vld [vmem:[#allocation6 + $0x30] sm:$0xff] (!%p1116_p11)   ;;  %v1287_v9 = vld [vmem:[#allocation6 + $0x38] sm:$0xff] (!%p1116_p11)  }
  0x63   : > { %v394_v10 = vld [vmem:[%s1855_s0] sm:$0x1] (!%p1116_p11) }
  0x64   : > { %v1117_v11 = vld [vmem:[%s1857_s2] ss:$0 sm:$0xff] (!%p1116_p11) }
  0x65   : > { %1180 = vmatpush3.bf16.msra.mxu0 (!%p1116_p11), %v1281_v3 }
  0x66   : > { %1181 = vmatprep.subr.bf16.mxu0 (!%p1116_p11), %v1503_v1 }
  0x69   : > { %1182 = vmatpush3.bf16.msra.mxu0 %v1282_v4 }
  0x6a   : > { %1183 = vmatprep.subr.bf16.mxu0 %v1503_v1 }
  0x6d   : > { %1184 = vmatpush3.bf16.msra.mxu0 %v1283_v5 }
  0x6e   : > { %1185 = vmatprep.subr.bf16.mxu0 %v1503_v1 }
  0x71   : > { %1186 = vmatpush3.bf16.msra.mxu0 %v1284_v6 }
  0x72   : > { %1187 = vmatprep.subr.bf16.mxu0 %v1503_v1 }
  0x75   : > { %1188 = vmatpush3.bf16.msra.mxu0 %v1285_v7 }
  0x76   : > { %1189 = vmatprep.subr.bf16.mxu0 %v1503_v1 }
  0x79   : > { %1190 = vmatpush3.bf16.msra.mxu0 %v1286_v8 }
  0x7a   : > { %1191 = vmatprep.subr.bf16.mxu0 %v1503_v1 }
  0x7d   : > { %1192 = vmatpush3.bf16.msra.mxu0 %v1287_v9 }
  0x80   : > { %1194 = vmatmul.mubr.bf16.vlgmr.msra.gmra.mrb[0].mxu0 %v394_v10 }
 0x153   : > { %v500_v12 = vpop.f32.mrb[0].mxu0 }
 0x154   : > { %v501_v13 = vadd.f32 %v1117_v11, %v500_v12  ;;  %v1195_v14 = vpop.f32.mrb[1].mxu0 }
 0x155   : > { %v503_v15 = vpop.f32.mrb[2].mxu0 }
 0x156   : > { %v506_v16 = vmax.f32 %v501_v13, 0.0  ;;  %v1196_v17 = vpop.f32.mrb[3].mxu0 }
 0x158   : > { %v507_v18 = vpack.c.bf16 %v506_v16, %v506_v16 }
 0x15a   : > { %508 = vst [vmem:[#allocation2] sm:$0x1] %v507_v18 }
 0x15b PF: > { %v1290_v19 = vld [vmem:[%s1710_s8 + $0x4] ss:$16 sps:$4 sm:$0xff]   ;;  %v1292_v20 = vld [vmem:[%s1710_s8 + $0xc] ss:$16 sps:$4 sm:$0xff]   ;;  %v1506_v21 = vmov 0   ;;  %v548_v54 = vlaneseq  ;;  %vm833_vm2 = vcmask 1041408  }
 0x15c   : > { %760 = vmatprep.mubr.bf16.mxu0 %v1506_v21  ;;  %801 = vmatprep.mubr.bf16.mxu1 %v1506_v21  ;;  %v1294_v22 = vld [vmem:[%s1710_s8] ss:$16 sps:$4 sm:$0xff]   ;;  %v1295_v23 = vld [vmem:[%s1710_s8 + $0x8] ss:$16 sps:$4 sm:$0xff]   ;;  %v1296_v24 = vld [vmem:[%s1710_s8 + $0x24] ss:$16 sps:$4 sm:$0xff]  }
 0x15d   : > { %728 = vmatprep.subr.bf16.mxu0 %v1290_v19  ;;  %1289 = vset.pattern.permute.xlu1 %v1506_v21  ;;  %v1298_v25 = vld [vmem:[%s1710_s8 + $0x2c] ss:$16 sps:$4 sm:$0xff]   ;;  %v1300_v26 = vld [vmem:[%s1710_s8 + $0x20] ss:$16 sps:$4 sm:$0xff]   ;;  %v1301_v27 = vld [vmem:[%s1710_s8 + $0x28] ss:$16 sps:$4 sm:$0xff]  }
 0x15e   : > { %769 = vmatprep.subr.bf16.mxu1 %v1292_v20  ;;  %1288 = vset.pattern.permute.xlu0 %v1506_v21  ;;  %v1302_v28 = vld [vmem:[%s1710_s8 + $0x44] ss:$16 sps:$4 sm:$0xff]   ;;  %v1304_v29 = vld [vmem:[%s1710_s8 + $0x4c] ss:$16 sps:$4 sm:$0xff]   ;;  %v1306_v30 = vld [vmem:[%s1710_s8 + $0x40] ss:$16 sps:$4 sm:$0xff]  }
 0x15f   : > { %729 = vmatpush1.bf16.msra.mxu0 %v1294_v22  ;;  %770 = vmatpush1.bf16.msra.mxu1 %v1295_v23  ;;  %v1307_v31 = vld [vmem:[%s1710_s8 + $0x48] ss:$16 sps:$4 sm:$0xff]   ;;  %v1308_v32 = vld [vmem:[%s1710_s8 + $0x64] ss:$16 sps:$4 sm:$0xff]   ;;  %v1310_v33 = vld [vmem:[%s1710_s8 + $0x6c] ss:$16 sps:$4 sm:$0xff]  }
 0x160   : > { %730 = vmatprep.subr.bf16.mxu0 %v1296_v24  ;;  %771 = vmatprep.subr.bf16.mxu1 %v1298_v25  ;;  %v1312_v34 = vld [vmem:[%s1710_s8 + $0x60] ss:$16 sps:$4 sm:$0xff]   ;;  %v1313_v35 = vld [vmem:[%s1710_s8 + $0x68] ss:$16 sps:$4 sm:$0xff]   ;;  %v1314_v36 = vld [vmem:[%s1710_s8 + $0x84] ss:$16 sps:$4 sm:$0xff]  }
 0x161   : > { %v1316_v37 = vld [vmem:[%s1710_s8 + $0x8c] ss:$16 sps:$4 sm:$0xff]   ;;  %v1318_v38 = vld [vmem:[%s1710_s8 + $0x80] ss:$16 sps:$4 sm:$0xff]   ;;  %v1319_v39 = vld [vmem:[%s1710_s8 + $0x88] ss:$16 sps:$4 sm:$0xff]  }
 0x162   : > { %v1320_v40 = vld [vmem:[%s1710_s8 + $0xa4] ss:$16 sps:$4 sm:$0xff]   ;;  %v1322_v41 = vld [vmem:[%s1710_s8 + $0xac] ss:$16 sps:$4 sm:$0xff]   ;;  %v1324_v42 = vld [vmem:[%s1710_s8 + $0xa0] ss:$16 sps:$4 sm:$0xff]  }
 0x163   : > { %731 = vmatpush1.bf16.msra.mxu0 %v1300_v26  ;;  %772 = vmatpush1.bf16.msra.mxu1 %v1301_v27  ;;  %v1325_v43 = vld [vmem:[%s1710_s8 + $0xa8] ss:$16 sps:$4 sm:$0xff]   ;;  %v1326_v44 = vld [vmem:[%s1710_s8 + $0xc4] ss:$16 sps:$4 sm:$0xff]   ;;  %v1328_v45 = vld [vmem:[%s1710_s8 + $0xcc] ss:$16 sps:$4 sm:$0xff]  }
 0x164   : > { %732 = vmatprep.subr.bf16.mxu0 %v1302_v28  ;;  %773 = vmatprep.subr.bf16.mxu1 %v1304_v29  ;;  %v892_v46 = vld [vmem:[%s1860_s5] sm:$0x3]  ;;  %v1330_v47 = vld [vmem:[%s1710_s8 + $0xc0] ss:$16 sps:$4 sm:$0xff]   ;;  %v1332_v49 = vld [vmem:[%s1710_s8 + $0xe4] ss:$16 sps:$4 sm:$0xff]  }
 0x165   : > { %894 = vperm.xlu1 %1289, %v892_v46   ;;  %v1331_v48 = vld [vmem:[%s1710_s8 + $0xc8] ss:$16 sps:$4 sm:$0xff]   ;;  %v1334_v50 = vld [vmem:[%s1710_s8 + $0xec] ss:$16 sps:$4 sm:$0xff]   ;;  %v1336_v51 = vld [vmem:[%s1710_s8 + $0xe0] ss:$16 sps:$4 sm:$0xff]  }
 0x166   : > { %v1337_v52 = vld [vmem:[%s1710_s8 + $0xe8] ss:$16 sps:$4 sm:$0xff]   ;;  %v549_v55 = vshrl.u32 %v548_v54, 7  ;;  %v1507_v60 = vmov 1983009808   ;;  %vm877_vm3 = vcmask 1024  }
 0x167   : > { %733 = vmatpush1.bf16.msra.mxu0 %v1306_v30  ;;  %774 = vmatpush1.bf16.msra.mxu1 %v1307_v31  ;;  %v513_v53 = vld [vmem:[#allocation2] sm:$0x1]  ;;  %v817_v61 = vunpack.c.l.s4 %v1507_v60  ;;  %v843_v29 = vld [vmem:[#allocation3] sm:$0x3]  ;;  %s1158_s8 = sshll.u32 %s1486_s27, 9  ;;  %p1159_p13 = scmp.ne.s32.totalorder %s1486_s27, 1 }
 0x168   : > { %734 = vmatprep.subr.bf16.mxu0 %v1308_v32  ;;  %775 = vmatprep.subr.bf16.mxu1 %v1310_v33  ;;  %v550_v56 = vsub.s32 0, %v549_v55  ;;  %v558_v57 = vsub.s32 2, %v549_v55  ;;  %v546_v58 = vld [vmem:[%s378_s20] sm:$0xf]  ;;  %v554_v59 = vsub.s32 1, %v549_v55  ;;  %v562_v62 = vsub.s32 3, %v549_v55 }
 0x169   : > { %v818_v2 = vunpack.c.0.s8 %v817_v61  ;;  %v882_v33 = vand.u32 127, %v548_v54 }
 0x16a   : > { %v551_v63 = vrot.slane %v546_v58, %v550_v56  ;;  %v559_v0 = vrot.slane %v546_v58, %v558_v57  ;;  %v555_v1 = vrot.slane %v546_v58, %v554_v59  ;;  %v563_v3 = vrot.slane %v546_v58, %v562_v62 }
 0x16b   : > { %735 = vmatpush1.bf16.msra.mxu0 %v1312_v34  ;;  %776 = vmatpush1.bf16.msra.mxu1 %v1313_v35  ;;  %v821_v11 = vsub.s32 %v818_v2, %v549_v55  ;;  %v883_v34 = vadd.s32 128, %v882_v33 }
 0x16c   : > { %736 = vmatprep.subr.bf16.mxu0 %v1314_v36  ;;  %777 = vmatprep.subr.bf16.mxu1 %v1316_v37 }
 0x16f   : > { %737 = vmatpush1.bf16.msra.mxu0 %v1318_v38  ;;  %778 = vmatpush1.bf16.msra.mxu1 %v1319_v39 }
 0x170   : > { %738 = vmatprep.subr.bf16.mxu0 %v1320_v40  ;;  %779 = vmatprep.subr.bf16.mxu1 %v1322_v41  ;;  %v886_v40 = vstv %s1158_s8 }
 0x171   : > { %v888_v46 = vadd.s32 %v886_v40, %v883_v34 }
 0x173   : > { %739 = vmatpush1.bf16.msra.mxu0 %v1324_v42  ;;  %780 = vmatpush1.bf16.msra.mxu1 %v1325_v43 }
 0x174   : > { %740 = vmatprep.subr.bf16.mxu0 %v1326_v44  ;;  %781 = vmatprep.subr.bf16.mxu1 %v1328_v45  ;;  %v887_v45 = vadd.s32 %v886_v40, %v882_v33 }
 0x177   : > { %741 = vmatpush1.bf16.msra.mxu0 %v1330_v47  ;;  %782 = vmatpush1.bf16.msra.mxu1 %v1331_v48  ;;  %v884_v48 = vadd.s32 256, %v882_v33 }
 0x178   : > { %742 = vmatprep.subr.bf16.mxu0 %v1332_v49  ;;  %783 = vmatprep.subr.bf16.mxu1 %v1334_v50  ;;  %v885_v50 = vadd.s32 384, %v882_v33 }
 0x179   : > { %v889_v49 = vadd.s32 %v886_v40, %v884_v48 }
 0x17a   : > { %v890_v54 = vadd.s32 %v886_v40, %v885_v50 }
 0x17b   : > { %743 = vmatpush1.bf16.msra.mxu0 %v1336_v51  ;;  %784 = vmatpush1.bf16.msra.mxu1 %v1337_v52 }
 0x17e   : > { %761 = vmatmul.mubr.bf16.vlgmr.msra.gmra.mrb[0].mxu0 %v513_v53  ;;  %802 = vmatmul.mubr.bf16.vlgmr.msra.gmra.mrb[0].mxu1 %v513_v53 }
 0x1e4   : > { %v895_v47 = vpop.permute.xlu1 %894 }
 0x1e5   : > { %vm896_vm4 = vcmp.eq.s32.totalorder %v887_v45, %v895_v47  ;;  %vm897_vm5 = vcmp.eq.s32.totalorder %v888_v46, %v895_v47  ;;  %vm898_vm6 = vcmp.eq.s32.totalorder %v889_v49, %v895_v47  ;;  %vm899_vm7 = vcmp.eq.s32.totalorder %v890_v54, %v895_v47 }
 0x251   : > { %v762_v4 = vpop.f32.mrb[0].mxu0  ;;  %v803_v5 = vpop.f32.mrb[0].mxu1 }
 0x252   : > { %v763_v6 = vadd.f32 %v762_v4, %v551_v63  ;;  %v1773_v7 = vadd.f32 %v803_v5, %v559_v0  ;;  %v764_v8 = vpop.f32.mrb[1].mxu0  ;;  %v805_v9 = vpop.f32.mrb[1].mxu1 }
 0x253   : > { %v765_v10 = vadd.f32 %v764_v8, %v555_v1  ;;  %v1775_v12 = vadd.f32 %v805_v9, %v563_v3  ;;  %v766_v13 = vpop.f32.mrb[2].mxu0  ;;  %v807_v14 = vpop.f32.mrb[2].mxu1 }
 0x254   : > { %v767_v15 = vpop.f32.mrb[3].mxu0  ;;  %v808_v16 = vpop.f32.mrb[3].mxu1  ;;  %v834_v17 = vsel %vm833_vm2, %v763_v6, -inf  ;;  %v836_v18 = vsel %vm833_vm2, %v1773_v7, -inf  ;;  %v900_v51 = vsel %vm896_vm4, %v763_v6, 0.0  ;;  %v902_v63 = vsel %vm898_vm6, %v1773_v7, 0.0 }
 0x255   : > { %v814_v19 = vcombine.low %v763_v6, %v765_v10  ;;  %v815_v20 = vcombine.low %v1773_v7, %v1775_v12  ;;  %v835_v21 = vsel %vm833_vm2, %v765_v10, -inf  ;;  %v837_v22 = vsel %vm833_vm2, %v1775_v12, -inf  ;;  %v845_v13 = vld [vmem:[#allocation4] sm:$0x3] }
 0x256   : > { %v838_v23 = vmax.f32 %v834_v17, %v835_v21  ;;  %v839_v24 = vmax.f32 %v836_v18, %v837_v22  ;;  %v901_v52 = vsel %vm897_vm5, %v765_v10, 0.0  ;;  %v904_v55 = vsel %vm833_vm2, %v900_v51, 0.0  ;;  %v891_v17 = vld [vmem:[#allocation5] sm:$0x3] }
 0x257   : > { %v822_v25 = vrot.slane %v814_v19, %v821_v11  ;;  %v829_v26 = vrot.slane %v815_v20, %v821_v11  ;;  %v905_v56 = vsel %vm833_vm2, %v901_v52, 0.0  ;;  %v907_v4 = vsel %vm833_vm2, %v902_v63, 0.0 }
 0x258   : > { %v840_v27 = vmax.f32 %v838_v23, %v839_v24  ;;  %v906_v0 = vadd.f32 %v905_v56, %v904_v55 }
 0x259   : > { %v830_v28 = vcombine.low %v822_v25, %v829_v26 }
 0x25a   : > { %841 = vmax.xlane.f32.xlu0 %v840_v27  ;;  %v908_v8 = vadd.f32 %v907_v4, %v906_v0 }
 0x25b   : > { %832 = vst [vmem:[%s1724_s22] sm:$0xff] %v830_v28 }
 0x2e7   : > { %v842_v30 = vpop.xlane.xlu0 %841 }
 0x2e8   : > { %v844_v31 = vmax.f32 %v843_v29, %v842_v30 }
 0x2ea   : > { %v846_v32 = vsub.f32 %v843_v29, %v844_v31  ;;  %879 = vst.msk [vmem:[#allocation3] sm:$0x3] %vm877_vm3, %v844_v31  ;;  %852 = vperm.xlu0 %1288, %v844_v31  }
 0x2ec   : > { %v847_v11 = vmul.f32 1.442695, %v846_v32 }
 0x2f1   : > { %v919_v21 = vld [vmem:[#allocation3] sm:$0x3] (!%p1159_p13) }
 0x369   : > { %v853_v35 = vpop.permute.xlu0 %852 }
 0x36a   : > { %v855_v36 = vsub.f32 %v763_v6, %v853_v35  ;;  %v856_v37 = vsub.f32 %v765_v10, %v853_v35  ;;  %v857_v38 = vsub.f32 %v1773_v7, %v853_v35  ;;  %v858_v39 = vsub.f32 %v1775_v12, %v853_v35 }
 0x36b   : > { %v903_v6 = vsel %vm899_vm7, %v1775_v12, 0.0 }
 0x36c   : > { %v859_v41 = vmul.f32 1.442695, %v855_v36  ;;  %v861_v42 = vmul.f32 1.442695, %v856_v37  ;;  %v863_v43 = vmul.f32 1.442695, %v857_v38 }
 0x36d   : > { %v865_v44 = vmul.f32 1.442695, %v858_v39  ;;  %v909_v9 = vsel %vm833_vm2, %v903_v6, 0.0 }
 0x36e   : > { %1338 = vpow2.f32 %v859_v41  ;;  %v910_v10 = vadd.f32 %v909_v9, %v908_v8 }
 0x36f   : > { %1340 = vpow2.f32 %v861_v42 }
 0x370   : > { %1342 = vpow2.f32 %v863_v43 }
 0x371   : > { %1344 = vpow2.f32 %v865_v44 }
 0x372   : > { %1346 = vpow2.f32 %v847_v11 }
 0x378   : > { %v1339_v53 = vpop.eup %1338 }
 0x379   : > { %v1341_v57 = vpop.eup %1340  ;;  %v867_v58 = vsel %vm833_vm2, %v1339_v53, 0.0 }
 0x37a   : > { %v1343_v59 = vpop.eup %1342  ;;  %v868_v60 = vsel %vm833_vm2, %v1341_v57, 0.0 }
 0x37b   : > { %v1345_v61 = vpop.eup %1344  ;;  %v869_v62 = vadd.f32 %v868_v60, %v867_v58  ;;  %v870_v1 = vsel %vm833_vm2, %v1343_v59, 0.0 }
 0x37c   : > { %v872_v3 = vsel %vm833_vm2, %v1345_v61, 0.0  ;;  %v1347_v7 = vpop.eup %1346 }
 0x37d   : > { %v871_v2 = vadd.f32 %v870_v1, %v869_v62  ;;  %v849_v14 = vmul.f32 %v1347_v7, %v845_v13 }
 0x37f   : > { %v873_v5 = vadd.f32 %v872_v3, %v871_v2 }
 0x381   : > { %874 = vadd.xlane.f32.xlu1 %v873_v5 }
 0x385   : > { %911 = vadd.xlane.f32.xlu1 %v910_v10 }
 0x40e   : > { %v875_v15 = vpop.xlane.xlu1 %874 }
 0x40f   : > { %v876_v16 = vadd.f32 %v875_v15, %v849_v14  ;;  %918 = sbr.rel (%p1159_p13) target bundleno = 1067 (0x42b), region = 60 }
 0x411   : > { %878 = vst.msk [vmem:[#allocation4] sm:$0x3] %vm877_vm3, %v876_v16 }
 0x412   : > { %v912_v18 = vpop.xlane.xlu1 %911 }
 0x413   : > { %v913_v19 = vadd.f32 %v912_v18, %v891_v17 }
 0x415   : > { %914 = vst.msk [vmem:[#allocation5] sm:$0x3] %vm877_vm3, %v913_v19 }
 0x418   : > { %v920_v12 = vld [vmem:[#allocation4] sm:$0x3] }
 0x419   : > { %1348 = vlog2.f32 %v920_v12 }
 0x41c   : > { %v924_v23 = vld [vmem:[#allocation5] sm:$0x3] }
 0x423   : > { %v1349_v20 = vpop.eup %1348 }
 0x424   : > { %v922_v22 = vmul.f32 0.6931472, %v1349_v20 }
 0x426   : > { %v923_v24 = vadd.f32 %v922_v22, %v919_v21 }
 0x428   : > { %v925_v25 = vsub.f32 %v923_v24, %v924_v23 }
 0x42a   : > { %926 = vst.msk [vmem:[%s1862_s7] sm:$0x3] %vm877_vm3, %v925_v25 }
 0x42b PF: > { %s1167_s18 = sshll.u32 %s1486_s27, 7  ;;  %s948_s16 = sshll.u32 %s1724_s22, 4  ;;  %s949_s16 = int_to_ptr.vmem [resolvable:$true] %s948_s16 }
 0x42c   : > { %s1811_s11 = scalar_lea.hbm %s1861_s6, %s1167_s18  ;;  %s928_s24 = scalar_lea.sflag [#allocation8], %s1706_s10 }
 0x42d   : > { %s1408_s23 = scalar_lea.vmem %s949_s16, 128  ;;  %p1888_p1 = scmp.ne.s32.totalorder %s1878_s12, 0 }
 0x42e   : > { %p1409_p4 = scmp.ne.s32.totalorder %s949_s16, %s1408_s23  ;;  %s1508_s29 = smov [#allocation11]  }
 0x42f   : > { %s1412_s13 = sshll.u32 %s1508_s29, 4  ;;  %s1413_s13 = int_to_ptr.vmem [resolvable:$false] %s1412_s13 }
 0x430   : > { %p1410_p10 = pnand %p1409_p4, %p1888_p1  ;;  %s1414_s15 = scalar_lea.vmem %s1413_s13, 256 }
 0x431   : > { %p1415_p6 = scmp.lt.s32.totalorder %s949_s16, %s1413_s13  ;;  %p1416_p0 = scmp.lt.s32.totalorder %s1414_s15, %s1408_s23 }
 0x432   : > { %p1411_p3 = pneg %p1410_p10 }
 0x433   : > { %p1417_p2 = por %p1416_p0, %p1415_p6 }
 0x435   : > { %p1418_p7 = pnand %p1417_p2, %p1411_p3 }
 0x437   : > { %1421 = shalt.err (!%p1418_p7)
}
 0x438   : > { %s1422_s27 = scalar_lea.hbm %s1811_s11, 128  ;;  %s1426_s30 = scalar_lea.hbm %s1861_s6, 256 }
 0x439   : > { %p1423_p12 = scmp.ne.s32.totalorder %s1811_s11, %s1422_s27  ;;  %p1427_p9 = scmp.lt.u32.totalorder %s1811_s11, %s1861_s6 }
 0x43a   : > { %p1428_p11 = scmp.lt.u32.totalorder %s1426_s30, %s1422_s27  ;;  %p1430_p4 = scmp.lt.u32.totalorder %s1422_s27, %s1811_s11 }
 0x43b   : > { %p1424_p5 = pnand %p1423_p12, %p1888_p1 }
 0x43c   : > { %p1429_p13 = por %p1428_p11, %p1427_p9 }
 0x43d   : > { %p1425_p8 = pneg %p1424_p5 }
 0x43e   : > { %p1431_p10 = por %p1430_p4, %p1429_p13 }
 0x440   : > { %p1432_p3 = pnand %p1431_p10, %p1425_p8 }
 0x442   : > { %1435 = shalt.err (!%p1432_p3)
}
 0x443   : > { %1203 = dma.vmem_to_hbm [thread:$0]  (%p1888_p1), %s949_s16, 128, %s1811_s11, %s928_s24  }
 0x444 PF: > { %s1889_s9 = sld [smem:[#allocation15_spill]]  ;;  %s1890_s18 = sld [smem:[#allocation17_spill]] }
 0x445   : > { %s1891_s17 = sld [smem:[#allocation16_spill]] }
 0x44a   : > { %s970_s20 = sand.u32 1, %s1889_s9   ;;  %p1892_p6 = scmp.ne.s32.totalorder %s1890_s18, 0 }
 0x44b   : > { %p1893_p0 = scmp.ge.s32.totalorder %s1891_s17, 2  ;;  %s971_s23 = scalar_lea.sflag [#allocation8], %s970_s20 }
 0x44d   : > { %p1214_p2 = pnand %p1893_p0, %p1892_p6 }
 0x44f   : > { %1469 = dma.done.wait (!%p1214_p2), %s971_s23, 128  }
 0x450   : > { %1471 = vsyncadd (!%p1214_p2), %s971_s23, 4294967168  ;;  %s25_s29 = sadd.s32 1, %s1891_s17   ;;  %s1894_s24 = smov %s1478_s25 }
 0x451   : > { %p22_p7 = scmp.ge.s32.totalorder %s25_s29, 4   ;;  %s1895_s25 = smov %s1482_s26 }
 0x452   : > { %s1896_s26 = smov %s1667_s21  ;;  %s1897_s27 = smov %s1490_s28 }
 0x453   : > { %s1898_s28 = smov %s1900_s19  ;;  %24 = sbr.rel (!%p22_p7) target bundleno = 7 (0x7), region = 123 }
 0x45a   :  { %976 = vsyncpa [#allocation7], 1 }
 0x45b   :  { %978 = vsyncpa [#allocation7 + $0x1], 1 }
 0x45c   :  { %979 = vsyncpa [#allocation10], 1 }
 0x45d   :  { %981 = vsyncpa [#allocation10 + $0x1], 1 }
 0x45e   :  { %982 = vsyncpa [#allocation8], 1 }
 0x45f   :  { %984 = vsyncpa [#allocation8 + $0x1], 1 }

</bundles_post_ra>
